<compile_context>
chip_gen: v7x
topology: tpu7x:2x2x1
jax: 0.10.0
libtpu: 0.0.40
codegen_flags: <defaults>
</compile_context>

<pallas_src>
import functools

import jax
import jax.numpy as jnp
from jax import lax
from jax.experimental import pallas as pl
from jax.experimental.pallas import tpu as pltpu


def _round_up(n, m):
    return ((n + m - 1) // m) * m


def _piano_roll_kernel(x_ref, wih_ref, whh_ref, b_ref, gamma_ref, beta_ref,
                       wout_ref, bout_ref, o_ref, h_ref, c_ref, xg_ref, *,
                       hidden_size, batch, last_chunk_steps, unroll,
                       needs_batch_mask):
    """One grid step = one chunk of Tc time steps.

    x_ref:       (Tc, Bp, I)   time-major input chunk (f32 or bf16), Bp = 8-padded batch
    wih_ref:     (I, 4H)       LSTM input weights^T, gate order [i, f, g, o]
    whh_ref:     (H, 4H)       LSTM recurrent weights^T
    b_ref:       (1, 4H)       b_ih + b_hh
    gamma_ref:   (1, H)        BatchNorm weight
    beta_ref:    (1, H)        BatchNorm bias
    wout_ref:    (H, I)        Linear weight^T
    bout_ref:    (1, I)        Linear bias
    o_ref:       (Bp, I)       sigmoid output (rows >= batch sliced off by wrapper)
    h_ref/c_ref: (Bp, H)       VMEM scratch carrying the LSTM state across chunks
    xg_ref:      (Tc*Bp, 4H)   VMEM staging for the hoisted input projection
    """
    H = hidden_size
    Tc, Bp, I = x_ref.shape
    G = 4 * H
    chunk = pl.program_id(0)
    last = pl.num_programs(0) - 1

    @pl.when(chunk == 0)
    def _init():
        h_ref[...] = jnp.zeros_like(h_ref)
        c_ref[...] = jnp.zeros_like(c_ref)

    # sigmoid(z) = 0.5 * (tanh(z/2) + 1): pre-scale the i/f/o gate lanes by 0.5
    # (folded ONCE per chunk into xg and Whh, off the serial chain), then one
    # full-vreg tanh per step + a cheap VPU affine.  Cuts the serial EUP count
    # per step from 3 (sigmoid + tanh + tanh) to 2.
    lane = lax.broadcasted_iota(jnp.int32, (1, G), 1)
    is_g = (lane >= 2 * H) & (lane < 3 * H)
    pre = jnp.where(is_g, 1.0, 0.5).astype(jnp.float32)          # [.5 .5 1 .5]
    post_bias = jnp.where(is_g, 0.0, 0.5).astype(jnp.float32)    # [.5 .5 0 .5]
    post_scale = pre

    # Hoisted input projection + bias for the whole chunk: one well-shaped MXU
    # matmul staged in VMEM, so the serial loop only does h @ Whh + elementwise.
    # (bf16 x is upcast here; accumulation and everything downstream stays f32.)
    x_flat = x_ref[...].astype(jnp.float32).reshape(Tc * Bp, I)
    xg_ref[...] = (jnp.dot(x_flat, wih_ref[...],
                           preferred_element_type=jnp.float32)
                   + b_ref[...]) * pre
    whh = whh_ref[...] * pre                                     # (H, 4H), pre-scaled

    # Note: Whh could be held in MXU weight-staging registers across the chunk
    # (pltpu.matmul_push_rhs / matmul_acc_lhs / matmul_pop); kept as jnp.dot for
    # portability across v5e/v6e (MRF) and v7x (MRB) result paths.

    def step(t, carry):
        h, c = carry
        row = pl.multiple_of(t * Bp, 8)                          # aligned sublane slice
        gates = xg_ref[pl.ds(row, Bp), :] + jnp.dot(
            h, whh, preferred_element_type=jnp.float32)          # (Bp, 4H), pre-scaled
        act = jnp.tanh(gates) * post_scale + post_bias           # [sig sig tanh sig]
        i_g = act[:, 0 * H:1 * H]
        f_g = act[:, 1 * H:2 * H]
        g_g = act[:, 2 * H:3 * H]
        o_g = act[:, 3 * H:4 * H]
        c = f_g * c + i_g * g_g
        h = o_g * jnp.tanh(c)
        return h, c

    def run_steps(n_steps):
        h, c = lax.fori_loop(0, n_steps, step, (h_ref[...], c_ref[...]),
                             unroll=max(1, min(unroll, n_steps)))
        h_ref[...] = h
        c_ref[...] = c

    if last_chunk_steps == Tc:
        run_steps(Tc)                      # every chunk is full: no masking anywhere
    else:
        # Only the final chunk is short: steady-state chunks run the mask-free
        # full loop, the remainder chunk runs a statically shorter loop.  No
        # per-step selects on the serial h->h chain in either case.
        @pl.when(chunk != last)
        def _steady():
            run_steps(Tc)

        @pl.when(chunk == last)
        def _remainder():
            run_steps(last_chunk_steps)

    @pl.when(chunk == last)
    def _epilogue():
        h_last = h_ref[...]
        # BatchNorm1d, training mode (biased batch variance), eps=1e-5;
        # statistics are taken over the *valid* batch rows only.
        if needs_batch_mask:
            rows = lax.broadcasted_iota(jnp.int32, (Bp, H), 0)
            bmask = rows < batch
            inv_n = 1.0 / batch
            mean = jnp.sum(jnp.where(bmask, h_last, 0.0), axis=0,
                           keepdims=True) * inv_n
            diff = h_last - mean
            var = jnp.sum(jnp.where(bmask, diff * diff, 0.0), axis=0,
                          keepdims=True) * inv_n
        else:
            mean = jnp.mean(h_last, axis=0, keepdims=True)
            var = jnp.mean((h_last - mean) ** 2, axis=0, keepdims=True)
        normed = (h_last - mean) * lax.rsqrt(var + 1e-5) * gamma_ref[...] + beta_ref[...]

        # pitch_layer: Linear(H -> 128) + Sigmoid
        logits = jnp.dot(normed, wout_ref[...],
                         preferred_element_type=jnp.float32) + bout_ref[...]
        o_ref[...] = jax.nn.sigmoid(logits)


def piano_roll_lstm_forward(x, params, *, time_chunk=128, unroll=8,
                            bf16_inputs=False, time_major=False):
    """Forward pass of PianoRollLSTM.

    x: (B, T, 128) float32 (PyTorch batch_first), or (T, B, 128) if
       time_major=True (skips the wrapper-side transpose HBM round trip).
    Returns (B, 128) float32: sigmoid(Linear(BatchNorm(LSTM(x)[:, -1, :]))).
    """
    if time_major:
        T, B, I = x.shape
        x_tm = x
    else:
        B, T, I = x.shape
        x_tm = jnp.transpose(x, (1, 0, 2))                       # (T, B, I)
    H = params["w_hh"].shape[1]

    Bp = max(8, _round_up(B, 8))             # fill all 8 f32 sublanes of each vreg
    Tc = max(1, min(T, time_chunk))
    num_chunks = -(-T // Tc)
    Tp = num_chunks * Tc
    last_chunk_steps = T - (num_chunks - 1) * Tc

    # bf16 x halves streamed HBM bytes + the x VMEM double-buffer; the kernel
    # upcasts in VMEM so recurrence/activations stay f32.
    x_tm = x_tm.astype(jnp.bfloat16 if bf16_inputs else jnp.float32)
    if Tp != T or Bp != B:
        x_tm = jnp.pad(x_tm, ((0, Tp - T), (0, Bp - B), (0, 0)))

    wih_t = params["w_ih"].T.astype(jnp.float32)                 # (I, 4H)
    whh_t = params["w_hh"].T.astype(jnp.float32)                 # (H, 4H)
    b = (params["b_ih"] + params["b_hh"]).reshape(1, 4 * H).astype(jnp.float32)
    gamma = params["bn_gamma"].reshape(1, H).astype(jnp.float32)
    beta = params["bn_beta"].reshape(1, H).astype(jnp.float32)
    wout_t = params["w_out"].T.astype(jnp.float32)               # (H, I)
    bout = params["b_out"].reshape(1, I).astype(jnp.float32)

    kernel = functools.partial(
        _piano_roll_kernel,
        hidden_size=H, batch=B, last_chunk_steps=last_chunk_steps,
        unroll=unroll, needs_batch_mask=(Bp != B))

    const = lambda t: (0, 0)   # weights / output: same block every chunk
    out_padded = pl.pallas_call(
        kernel,
        out_shape=jax.ShapeDtypeStruct((Bp, I), jnp.float32),
        grid=(num_chunks,),
        in_specs=[
            pl.BlockSpec((Tc, Bp, I), lambda t: (t, 0, 0)),      # streamed x chunks
            pl.BlockSpec((I, 4 * H), const),
            pl.BlockSpec((H, 4 * H), const),
            pl.BlockSpec((1, 4 * H), const),
            pl.BlockSpec((1, H), const),
            pl.BlockSpec((1, H), const),
            pl.BlockSpec((H, I), const),
            pl.BlockSpec((1, I), const),
        ],
        out_specs=pl.BlockSpec((Bp, I), const),
        scratch_shapes=[
            pltpu.VMEM((Bp, H), jnp.float32),            # h carry
            pltpu.VMEM((Bp, H), jnp.float32),            # c carry
            pltpu.VMEM((Tc * Bp, 4 * H), jnp.float32),   # staged input projection
        ],
        compiler_params=pltpu.CompilerParams(
            dimension_semantics=("arbitrary",),          # serial time recurrence
            vmem_limit_bytes=32 * 1024 * 1024),
    )(x_tm, wih_t, whh_t, b, gamma, beta, wout_t, bout)

    return out_padded[:B]


def _reference_forward(x, params):
    """Pure-JAX reference matching PyTorch semantics, for sanity checking."""
    B, T, I = x.shape
    H = params["w_hh"].shape[1]
    wih_t = params["w_ih"].T
    whh_t = params["w_hh"].T
    b = params["b_ih"] + params["b_hh"]

    def step(carry, x_t):
        h, c = carry
        gates = x_t @ wih_t + h @ whh_t + b
        i_g = jax.nn.sigmoid(gates[:, 0 * H:1 * H])
        f_g = jax.nn.sigmoid(gates[:, 1 * H:2 * H])
        g_g = jnp.tanh(gates[:, 2 * H:3 * H])
        o_g = jax.nn.sigmoid(gates[:, 3 * H:4 * H])
        c = f_g * c + i_g * g_g
        h = o_g * jnp.tanh(c)
        return (h, c), None

    (h, _), _ = lax.scan(step, (jnp.zeros((B, H)), jnp.zeros((B, H))),
                         jnp.transpose(x, (1, 0, 2)))
    mean = jnp.mean(h, axis=0, keepdims=True)
    var = jnp.mean((h - mean) ** 2, axis=0, keepdims=True)
    normed = (h - mean) / jnp.sqrt(var + 1e-5) * params["bn_gamma"] + params["bn_beta"]
    return jax.nn.sigmoid(normed @ params["w_out"].T + params["b_out"])


def init_params(key, hidden_size=32, input_size=128):
    """Deterministic init mimicking PyTorch defaults (uniform(-1/sqrt(H), 1/sqrt(H)))."""
    H, I = hidden_size, input_size
    k = 1.0 / jnp.sqrt(jnp.float32(H))
    keys = jax.random.split(key, 6)
    u = lambda kk, shape: jax.random.uniform(kk, shape, jnp.float32, -k, k)
    return {
        "w_ih": u(keys[0], (4 * H, I)),
        "w_hh": u(keys[1], (4 * H, H)),
        "b_ih": u(keys[2], (4 * H,)),
        "b_hh": u(keys[3], (4 * H,)),
        "bn_gamma": jnp.ones((H,), jnp.float32),
        "bn_beta": jnp.zeros((H,), jnp.float32),
        "w_out": u(keys[4], (I, H)),
        "b_out": u(keys[5], (I,)),
    }


if __name__ == "__main__":
    key = jax.random.PRNGKey(0)
    kx1, kx2, kp = jax.random.split(key, 3)

    H, I = 32, 128
    params = init_params(kp, hidden_size=H, input_size=I)

    # Case 1: nominal small shape (B=2, T=8) — single full chunk, padded batch.
    x1 = jax.random.uniform(kx1, (2, 8, I), jnp.float32)
    out1 = jax.block_until_ready(piano_roll_lstm_forward(x1, params))
    ref1 = _reference_forward(x1, params)
    assert out1.shape == (2, I)
    assert jnp.allclose(out1, ref1, atol=1e-4, rtol=1e-4), "case1 mismatch vs JAX reference"

    # Case 2: longer sequence + non-multiple-of-8 batch with time_chunk=8 —
    # exercises multi-chunk streaming and the statically-shorter remainder chunk.
    x2 = jax.random.uniform(kx2, (5, 20, I), jnp.float32)
    out2 = jax.block_until_ready(piano_roll_lstm_forward(x2, params, time_chunk=8))
    ref2 = _reference_forward(x2, params)
    assert out2.shape == (5, I)
    assert jnp.allclose(out2, ref2, atol=1e-4, rtol=1e-4), "case2 mismatch vs JAX reference"

    # Case 3: time-major input path (no wrapper-side transpose round trip).
    out2_tm = jax.block_until_ready(
        piano_roll_lstm_forward(jnp.transpose(x2, (1, 0, 2)), params,
                                time_chunk=8, time_major=True))
    assert jnp.allclose(out2_tm, out2, atol=1e-6, rtol=1e-6), "time-major path mismatch"

    # Case 4: bf16-streamed x (halved HBM traffic for the only large input);
    # tolerance loosened only for the input-projection precision change.
    out2_bf = jax.block_until_ready(
        piano_roll_lstm_forward(x2, params, time_chunk=8, bf16_inputs=True))
    assert out2_bf.shape == (5, I)
    assert jnp.allclose(out2_bf, ref2, atol=5e-2), "bf16 input path drifted too far"

    print("KERNEL_OK")
</pallas_src>

<mosaic_0001>
module attributes {stable_mosaic.version = 11 : i64} {
  func.func @_piano_roll_kernel(%arg0: i32, %arg1: memref<8x8x128xf32, #tpu.memory_space<vmem>>, %arg2: memref<128x128xf32, #tpu.memory_space<vmem>>, %arg3: memref<32x128xf32, #tpu.memory_space<vmem>>, %arg4: memref<1x128xf32, #tpu.memory_space<vmem>>, %arg5: memref<1x32xf32, #tpu.memory_space<vmem>>, %arg6: memref<1x32xf32, #tpu.memory_space<vmem>>, %arg7: memref<32x128xf32, #tpu.memory_space<vmem>>, %arg8: memref<1x128xf32, #tpu.memory_space<vmem>>, %arg9: memref<8x128xf32, #tpu.memory_space<vmem>>, %arg10: memref<8x32xf32, #tpu.memory_space<vmem>>, %arg11: memref<8x32xf32, #tpu.memory_space<vmem>>, %arg12: memref<64x128xf32, #tpu.memory_space<vmem>>) attributes {dimension_semantics = [#tpu.dimension_semantics<arbitrary>], iteration_bounds = array<i64: 1>, scalar_prefetch = 0 : i64, scratch_operands = 3 : i64, tpu.core_type = #tpu.core_type<tc>, window_params = [{transform_indices = @transform_0, window_bounds = array<i64: 8, 8, 128>}, {pipeline_mode = #tpu.pipeline_mode<synchronous>, transform_indices = @transform_1, window_bounds = array<i64: 128, 128>}, {pipeline_mode = #tpu.pipeline_mode<synchronous>, transform_indices = @transform_2, window_bounds = array<i64: 32, 128>}, {pipeline_mode = #tpu.pipeline_mode<synchronous>, transform_indices = @transform_3, window_bounds = array<i64: 1, 128>}, {pipeline_mode = #tpu.pipeline_mode<synchronous>, transform_indices = @transform_4, window_bounds = array<i64: 1, 32>}, {pipeline_mode = #tpu.pipeline_mode<synchronous>, transform_indices = @transform_5, window_bounds = array<i64: 1, 32>}, {pipeline_mode = #tpu.pipeline_mode<synchronous>, transform_indices = @transform_6, window_bounds = array<i64: 32, 128>}, {pipeline_mode = #tpu.pipeline_mode<synchronous>, transform_indices = @transform_7, window_bounds = array<i64: 1, 128>}, {pipeline_mode = #tpu.pipeline_mode<synchronous>, transform_indices = @transform_8, window_bounds = array<i64: 8, 128>}]} {
    %c0_i32 = arith.constant 0 : i32
    %0 = arith.cmpi eq, %arg0, %c0_i32 : i32
    %1 = arith.extui %0 : i1 to i32
    %c0_i32_0 = arith.constant 0 : i32
    %2 = arith.cmpi ne, %1, %c0_i32_0 : i32
    scf.if %2 {
      %cst_50 = arith.constant 0.000000e+00 : f32
      %195 = vector.broadcast %cst_50 : f32 to vector<8x32xf32>
      %c0_51 = arith.constant 0 : index
      %c0_52 = arith.constant 0 : index
      %196 = vector.load %arg10[%c0_51, %c0_52] : memref<8x32xf32, #tpu.memory_space<vmem>>, vector<8x32xf32>
      tpu.vector_store %arg10[%c0_51, %c0_52], %195 {strides = array<i32>} : memref<8x32xf32, #tpu.memory_space<vmem>>, vector<8x32xf32>,
      %cst_53 = arith.constant 0.000000e+00 : f32
      %197 = vector.broadcast %cst_53 : f32 to vector<8x32xf32>
      %c0_54 = arith.constant 0 : index
      %c0_55 = arith.constant 0 : index
      %198 = vector.load %arg11[%c0_54, %c0_55] : memref<8x32xf32, #tpu.memory_space<vmem>>, vector<8x32xf32>
      tpu.vector_store %arg11[%c0_54, %c0_55], %197 {strides = array<i32>} : memref<8x32xf32, #tpu.memory_space<vmem>>, vector<8x32xf32>,
    } else {
    }
    %3 = tpu.iota {dimensions = array<i32: 1>} : vector<1x128xi32>
    %c64_i32 = arith.constant 64 : i32
    %4 = vector.broadcast %c64_i32 : i32 to vector<1x128xi32>
    %5 = arith.cmpi sge, %3, %4 : vector<1x128xi32>
    %c96_i32 = arith.constant 96 : i32
    %6 = vector.broadcast %c96_i32 : i32 to vector<1x128xi32>
    %7 = arith.cmpi slt, %3, %6 : vector<1x128xi32>
    %8 = arith.andi %5, %7 : vector<1x128xi1>
    %cst = arith.constant 1.000000e+00 : f32
    %cst_1 = arith.constant 5.000000e-01 : f32
    %9 = vector.broadcast %cst : f32 to vector<1x128xf32>
    %10 = vector.broadcast %cst_1 : f32 to vector<1x128xf32>
    %11 = arith.select %8, %9, %10 : vector<1x128xi1>, vector<1x128xf32>
    %cst_2 = arith.constant 0.000000e+00 : f32
    %cst_3 = arith.constant 5.000000e-01 : f32
    %12 = vector.broadcast %cst_2 : f32 to vector<1x128xf32>
    %13 = vector.broadcast %cst_3 : f32 to vector<1x128xf32>
    %14 = arith.select %8, %12, %13 : vector<1x128xi1>, vector<1x128xf32>
    %c0 = arith.constant 0 : index
    %c0_4 = arith.constant 0 : index
    %c0_5 = arith.constant 0 : index
    %15 = vector.load %arg1[%c0, %c0_4, %c0_5] : memref<8x8x128xf32, #tpu.memory_space<vmem>>, vector<8x8x128xf32>
    %16 = vector.shape_cast %15 : vector<8x8x128xf32> to vector<64x128xf32>
    %c0_6 = arith.constant 0 : index
    %c0_7 = arith.constant 0 : index
    %17 = vector.load %arg2[%c0_6, %c0_7] : memref<128x128xf32, #tpu.memory_space<vmem>>, vector<128x128xf32>
    %cst_8 = arith.constant dense<0.000000e+00> : vector<64x128xf32>
    %18 = tpu.matmul %16, %17, %cst_8 {dimension_numbers = #tpu.dot_dimension_numbers<[1], [0], [0], [1], [0, 0, 1, 1], [], []>} : vector<64x128xf32>, vector<128x128xf32>, vector<64x128xf32> -> vector<64x128xf32>
    %c0_9 = arith.constant 0 : index
    %c0_10 = arith.constant 0 : index
    %19 = vector.load %arg4[%c0_9, %c0_10] : memref<1x128xf32, #tpu.memory_space<vmem>>, vector<1x128xf32>
    %20 = vector.broadcast %19 : vector<1x128xf32> to vector<64x128xf32>
    %21 = arith.addf %18, %20 : vector<64x128xf32>
    %22 = vector.broadcast %11 : vector<1x128xf32> to vector<64x128xf32>
    %23 = arith.mulf %21, %22 : vector<64x128xf32>
    %c0_11 = arith.constant 0 : index
    %c0_12 = arith.constant 0 : index
    %24 = vector.load %arg12[%c0_11, %c0_12] : memref<64x128xf32, #tpu.memory_space<vmem>>, vector<64x128xf32>
    tpu.vector_store %arg12[%c0_11, %c0_12], %23 {strides = array<i32>} : memref<64x128xf32, #tpu.memory_space<vmem>>, vector<64x128xf32>,
    %c0_13 = arith.constant 0 : index
    %c0_14 = arith.constant 0 : index
    %25 = vector.load %arg3[%c0_13, %c0_14] : memref<32x128xf32, #tpu.memory_space<vmem>>, vector<32x128xf32>
    %26 = vector.broadcast %11 : vector<1x128xf32> to vector<32x128xf32>
    %27 = arith.mulf %25, %26 : vector<32x128xf32>
    %c0_15 = arith.constant 0 : index
    %c0_16 = arith.constant 0 : index
    %28 = vector.load %arg10[%c0_15, %c0_16] : memref<8x32xf32, #tpu.memory_space<vmem>>, vector<8x32xf32>
    %c0_17 = arith.constant 0 : index
    %c0_18 = arith.constant 0 : index
    %29 = vector.load %arg11[%c0_17, %c0_18] : memref<8x32xf32, #tpu.memory_space<vmem>>, vector<8x32xf32>
    %c0_i32_19 = arith.constant 0 : i32
    %c8_i32 = arith.constant 8 : i32
    %30 = arith.muli %c0_i32_19, %c8_i32 : i32
    %31 = tpu.assume_multiple %30, 8 : i32
    %32 = arith.index_cast %31 : i32 to index
    %c0_20 = arith.constant 0 : index
    %33 = vector.load %arg12[%32, %c0_20] : memref<64x128xf32, #tpu.memory_space<vmem>>, vector<8x128xf32>
    %cst_21 = arith.constant dense<0.000000e+00> : vector<8x128xf32>
    %34 = tpu.matmul %28, %27, %cst_21 {dimension_numbers = #tpu.dot_dimension_numbers<[1], [0], [0], [1], [0, 0, 1, 1], [], []>} : vector<8x32xf32>, vector<32x128xf32>, vector<8x128xf32> -> vector<8x128xf32>
    %35 = arith.addf %33, %34 : vector<8x128xf32>
    %36 = math.tanh %35 : vector<8x128xf32>
    %37 = vector.broadcast %11 : vector<1x128xf32> to vector<8x128xf32>
    %38 = arith.mulf %36, %37 : vector<8x128xf32>
    %39 = vector.broadcast %14 : vector<1x128xf32> to vector<8x128xf32>
    %40 = arith.addf %38, %39 : vector<8x128xf32>
    %41 = vector.extract_strided_slice %40 {offsets = [0, 0], sizes = [8, 32], strides = [1, 1]} : vector<8x128xf32> to vector<8x32xf32>
    %42 = vector.extract_strided_slice %40 {offsets = [0, 32], sizes = [8, 32], strides = [1, 1]} : vector<8x128xf32> to vector<8x32xf32>
    %43 = vector.extract_strided_slice %40 {offsets = [0, 64], sizes = [8, 32], strides = [1, 1]} : vector<8x128xf32> to vector<8x32xf32>
    %44 = vector.extract_strided_slice %40 {offsets = [0, 96], sizes = [8, 32], strides = [1, 1]} : vector<8x128xf32> to vector<8x32xf32>
    %45 = arith.mulf %42, %29 : vector<8x32xf32>
    %46 = arith.mulf %41, %43 : vector<8x32xf32>
    %47 = arith.addf %45, %46 : vector<8x32xf32>
    %48 = math.tanh %47 : vector<8x32xf32>
    %49 = arith.mulf %44, %48 : vector<8x32xf32>
    %c1_i32 = arith.constant 1 : i32
    %c8_i32_22 = arith.constant 8 : i32
    %50 = arith.muli %c1_i32, %c8_i32_22 : i32
    %51 = tpu.assume_multiple %50, 8 : i32
    %52 = arith.index_cast %51 : i32 to index
    %c0_23 = arith.constant 0 : index
    %53 = vector.load %arg12[%52, %c0_23] : memref<64x128xf32, #tpu.memory_space<vmem>>, vector<8x128xf32>
    %cst_24 = arith.constant dense<0.000000e+00> : vector<8x128xf32>
    %54 = tpu.matmul %49, %27, %cst_24 {dimension_numbers = #tpu.dot_dimension_numbers<[1], [0], [0], [1], [0, 0, 1, 1], [], []>} : vector<8x32xf32>, vector<32x128xf32>, vector<8x128xf32> -> vector<8x128xf32>
    %55 = arith.addf %53, %54 : vector<8x128xf32>
    %56 = math.tanh %55 : vector<8x128xf32>
    %57 = vector.broadcast %11 : vector<1x128xf32> to vector<8x128xf32>
    %58 = arith.mulf %56, %57 : vector<8x128xf32>
    %59 = vector.broadcast %14 : vector<1x128xf32> to vector<8x128xf32>
    %60 = arith.addf %58, %59 : vector<8x128xf32>
    %61 = vector.extract_strided_slice %60 {offsets = [0, 0], sizes = [8, 32], strides = [1, 1]} : vector<8x128xf32> to vector<8x32xf32>
    %62 = vector.extract_strided_slice %60 {offsets = [0, 32], sizes = [8, 32], strides = [1, 1]} : vector<8x128xf32> to vector<8x32xf32>
    %63 = vector.extract_strided_slice %60 {offsets = [0, 64], sizes = [8, 32], strides = [1, 1]} : vector<8x128xf32> to vector<8x32xf32>
    %64 = vector.extract_strided_slice %60 {offsets = [0, 96], sizes = [8, 32], strides = [1, 1]} : vector<8x128xf32> to vector<8x32xf32>
    %65 = arith.mulf %62, %47 : vector<8x32xf32>
    %66 = arith.mulf %61, %63 : vector<8x32xf32>
    %67 = arith.addf %65, %66 : vector<8x32xf32>
    %68 = math.tanh %67 : vector<8x32xf32>
    %69 = arith.mulf %64, %68 : vector<8x32xf32>
    %c2_i32 = arith.constant 2 : i32
    %c8_i32_25 = arith.constant 8 : i32
    %70 = arith.muli %c2_i32, %c8_i32_25 : i32
    %71 = tpu.assume_multiple %70, 8 : i32
    %72 = arith.index_cast %71 : i32 to index
    %c0_26 = arith.constant 0 : index
    %73 = vector.load %arg12[%72, %c0_26] : memref<64x128xf32, #tpu.memory_space<vmem>>, vector<8x128xf32>
    %cst_27 = arith.constant dense<0.000000e+00> : vector<8x128xf32>
    %74 = tpu.matmul %69, %27, %cst_27 {dimension_numbers = #tpu.dot_dimension_numbers<[1], [0], [0], [1], [0, 0, 1, 1], [], []>} : vector<8x32xf32>, vector<32x128xf32>, vector<8x128xf32> -> vector<8x128xf32>
    %75 = arith.addf %73, %74 : vector<8x128xf32>
    %76 = math.tanh %75 : vector<8x128xf32>
    %77 = vector.broadcast %11 : vector<1x128xf32> to vector<8x128xf32>
    %78 = arith.mulf %76, %77 : vector<8x128xf32>
    %79 = vector.broadcast %14 : vector<1x128xf32> to vector<8x128xf32>
    %80 = arith.addf %78, %79 : vector<8x128xf32>
    %81 = vector.extract_strided_slice %80 {offsets = [0, 0], sizes = [8, 32], strides = [1, 1]} : vector<8x128xf32> to vector<8x32xf32>
    %82 = vector.extract_strided_slice %80 {offsets = [0, 32], sizes = [8, 32], strides = [1, 1]} : vector<8x128xf32> to vector<8x32xf32>
    %83 = vector.extract_strided_slice %80 {offsets = [0, 64], sizes = [8, 32], strides = [1, 1]} : vector<8x128xf32> to vector<8x32xf32>
    %84 = vector.extract_strided_slice %80 {offsets = [0, 96], sizes = [8, 32], strides = [1, 1]} : vector<8x128xf32> to vector<8x32xf32>
    %85 = arith.mulf %82, %67 : vector<8x32xf32>
    %86 = arith.mulf %81, %83 : vector<8x32xf32>
    %87 = arith.addf %85, %86 : vector<8x32xf32>
    %88 = math.tanh %87 : vector<8x32xf32>
    %89 = arith.mulf %84, %88 : vector<8x32xf32>
    %c3_i32 = arith.constant 3 : i32
    %c8_i32_28 = arith.constant 8 : i32
    %90 = arith.muli %c3_i32, %c8_i32_28 : i32
    %91 = tpu.assume_multiple %90, 8 : i32
    %92 = arith.index_cast %91 : i32 to index
    %c0_29 = arith.constant 0 : index
    %93 = vector.load %arg12[%92, %c0_29] : memref<64x128xf32, #tpu.memory_space<vmem>>, vector<8x128xf32>
    %cst_30 = arith.constant dense<0.000000e+00> : vector<8x128xf32>
    %94 = tpu.matmul %89, %27, %cst_30 {dimension_numbers = #tpu.dot_dimension_numbers<[1], [0], [0], [1], [0, 0, 1, 1], [], []>} : vector<8x32xf32>, vector<32x128xf32>, vector<8x128xf32> -> vector<8x128xf32>
    %95 = arith.addf %93, %94 : vector<8x128xf32>
    %96 = math.tanh %95 : vector<8x128xf32>
    %97 = vector.broadcast %11 : vector<1x128xf32> to vector<8x128xf32>
    %98 = arith.mulf %96, %97 : vector<8x128xf32>
    %99 = vector.broadcast %14 : vector<1x128xf32> to vector<8x128xf32>
    %100 = arith.addf %98, %99 : vector<8x128xf32>
    %101 = vector.extract_strided_slice %100 {offsets = [0, 0], sizes = [8, 32], strides = [1, 1]} : vector<8x128xf32> to vector<8x32xf32>
    %102 = vector.extract_strided_slice %100 {offsets = [0, 32], sizes = [8, 32], strides = [1, 1]} : vector<8x128xf32> to vector<8x32xf32>
    %103 = vector.extract_strided_slice %100 {offsets = [0, 64], sizes = [8, 32], strides = [1, 1]} : vector<8x128xf32> to vector<8x32xf32>
    %104 = vector.extract_strided_slice %100 {offsets = [0, 96], sizes = [8, 32], strides = [1, 1]} : vector<8x128xf32> to vector<8x32xf32>
    %105 = arith.mulf %102, %87 : vector<8x32xf32>
    %106 = arith.mulf %101, %103 : vector<8x32xf32>
    %107 = arith.addf %105, %106 : vector<8x32xf32>
    %108 = math.tanh %107 : vector<8x32xf32>
    %109 = arith.mulf %104, %108 : vector<8x32xf32>
    %c4_i32 = arith.constant 4 : i32
    %c8_i32_31 = arith.constant 8 : i32
    %110 = arith.muli %c4_i32, %c8_i32_31 : i32
    %111 = tpu.assume_multiple %110, 8 : i32
    %112 = arith.index_cast %111 : i32 to index
    %c0_32 = arith.constant 0 : index
    %113 = vector.load %arg12[%112, %c0_32] : memref<64x128xf32, #tpu.memory_space<vmem>>, vector<8x128xf32>
    %cst_33 = arith.constant dense<0.000000e+00> : vector<8x128xf32>
    %114 = tpu.matmul %109, %27, %cst_33 {dimension_numbers = #tpu.dot_dimension_numbers<[1], [0], [0], [1], [0, 0, 1, 1], [], []>} : vector<8x32xf32>, vector<32x128xf32>, vector<8x128xf32> -> vector<8x128xf32>
    %115 = arith.addf %113, %114 : vector<8x128xf32>
    %116 = math.tanh %115 : vector<8x128xf32>
    %117 = vector.broadcast %11 : vector<1x128xf32> to vector<8x128xf32>
    %118 = arith.mulf %116, %117 : vector<8x128xf32>
    %119 = vector.broadcast %14 : vector<1x128xf32> to vector<8x128xf32>
    %120 = arith.addf %118, %119 : vector<8x128xf32>
    %121 = vector.extract_strided_slice %120 {offsets = [0, 0], sizes = [8, 32], strides = [1, 1]} : vector<8x128xf32> to vector<8x32xf32>
    %122 = vector.extract_strided_slice %120 {offsets = [0, 32], sizes = [8, 32], strides = [1, 1]} : vector<8x128xf32> to vector<8x32xf32>
    %123 = vector.extract_strided_slice %120 {offsets = [0, 64], sizes = [8, 32], strides = [1, 1]} : vector<8x128xf32> to vector<8x32xf32>
    %124 = vector.extract_strided_slice %120 {offsets = [0, 96], sizes = [8, 32], strides = [1, 1]} : vector<8x128xf32> to vector<8x32xf32>
    %125 = arith.mulf %122, %107 : vector<8x32xf32>
    %126 = arith.mulf %121, %123 : vector<8x32xf32>
    %127 = arith.addf %125, %126 : vector<8x32xf32>
    %128 = math.tanh %127 : vector<8x32xf32>
    %129 = arith.mulf %124, %128 : vector<8x32xf32>
    %c5_i32 = arith.constant 5 : i32
    %c8_i32_34 = arith.constant 8 : i32
    %130 = arith.muli %c5_i32, %c8_i32_34 : i32
    %131 = tpu.assume_multiple %130, 8 : i32
    %132 = arith.index_cast %131 : i32 to index
    %c0_35 = arith.constant 0 : index
    %133 = vector.load %arg12[%132, %c0_35] : memref<64x128xf32, #tpu.memory_space<vmem>>, vector<8x128xf32>
    %cst_36 = arith.constant dense<0.000000e+00> : vector<8x128xf32>
    %134 = tpu.matmul %129, %27, %cst_36 {dimension_numbers = #tpu.dot_dimension_numbers<[1], [0], [0], [1], [0, 0, 1, 1], [], []>} : vector<8x32xf32>, vector<32x128xf32>, vector<8x128xf32> -> vector<8x128xf32>
    %135 = arith.addf %133, %134 : vector<8x128xf32>
    %136 = math.tanh %135 : vector<8x128xf32>
    %137 = vector.broadcast %11 : vector<1x128xf32> to vector<8x128xf32>
    %138 = arith.mulf %136, %137 : vector<8x128xf32>
    %139 = vector.broadcast %14 : vector<1x128xf32> to vector<8x128xf32>
    %140 = arith.addf %138, %139 : vector<8x128xf32>
    %141 = vector.extract_strided_slice %140 {offsets = [0, 0], sizes = [8, 32], strides = [1, 1]} : vector<8x128xf32> to vector<8x32xf32>
    %142 = vector.extract_strided_slice %140 {offsets = [0, 32], sizes = [8, 32], strides = [1, 1]} : vector<8x128xf32> to vector<8x32xf32>
    %143 = vector.extract_strided_slice %140 {offsets = [0, 64], sizes = [8, 32], strides = [1, 1]} : vector<8x128xf32> to vector<8x32xf32>
    %144 = vector.extract_strided_slice %140 {offsets = [0, 96], sizes = [8, 32], strides = [1, 1]} : vector<8x128xf32> to vector<8x32xf32>
    %145 = arith.mulf %142, %127 : vector<8x32xf32>
    %146 = arith.mulf %141, %143 : vector<8x32xf32>
    %147 = arith.addf %145, %146 : vector<8x32xf32>
    %148 = math.tanh %147 : vector<8x32xf32>
    %149 = arith.mulf %144, %148 : vector<8x32xf32>
    %c6_i32 = arith.constant 6 : i32
    %c8_i32_37 = arith.constant 8 : i32
    %150 = arith.muli %c6_i32, %c8_i32_37 : i32
    %151 = tpu.assume_multiple %150, 8 : i32
    %152 = arith.index_cast %151 : i32 to index
    %c0_38 = arith.constant 0 : index
    %153 = vector.load %arg12[%152, %c0_38] : memref<64x128xf32, #tpu.memory_space<vmem>>, vector<8x128xf32>
    %cst_39 = arith.constant dense<0.000000e+00> : vector<8x128xf32>
    %154 = tpu.matmul %149, %27, %cst_39 {dimension_numbers = #tpu.dot_dimension_numbers<[1], [0], [0], [1], [0, 0, 1, 1], [], []>} : vector<8x32xf32>, vector<32x128xf32>, vector<8x128xf32> -> vector<8x128xf32>
    %155 = arith.addf %153, %154 : vector<8x128xf32>
    %156 = math.tanh %155 : vector<8x128xf32>
    %157 = vector.broadcast %11 : vector<1x128xf32> to vector<8x128xf32>
    %158 = arith.mulf %156, %157 : vector<8x128xf32>
    %159 = vector.broadcast %14 : vector<1x128xf32> to vector<8x128xf32>
    %160 = arith.addf %158, %159 : vector<8x128xf32>
    %161 = vector.extract_strided_slice %160 {offsets = [0, 0], sizes = [8, 32], strides = [1, 1]} : vector<8x128xf32> to vector<8x32xf32>
    %162 = vector.extract_strided_slice %160 {offsets = [0, 32], sizes = [8, 32], strides = [1, 1]} : vector<8x128xf32> to vector<8x32xf32>
    %163 = vector.extract_strided_slice %160 {offsets = [0, 64], sizes = [8, 32], strides = [1, 1]} : vector<8x128xf32> to vector<8x32xf32>
    %164 = vector.extract_strided_slice %160 {offsets = [0, 96], sizes = [8, 32], strides = [1, 1]} : vector<8x128xf32> to vector<8x32xf32>
    %165 = arith.mulf %162, %147 : vector<8x32xf32>
    %166 = arith.mulf %161, %163 : vector<8x32xf32>
    %167 = arith.addf %165, %166 : vector<8x32xf32>
    %168 = math.tanh %167 : vector<8x32xf32>
    %169 = arith.mulf %164, %168 : vector<8x32xf32>
    %c7_i32 = arith.constant 7 : i32
    %c8_i32_40 = arith.constant 8 : i32
    %170 = arith.muli %c7_i32, %c8_i32_40 : i32
    %171 = tpu.assume_multiple %170, 8 : i32
    %172 = arith.index_cast %171 : i32 to index
    %c0_41 = arith.constant 0 : index
    %173 = vector.load %arg12[%172, %c0_41] : memref<64x128xf32, #tpu.memory_space<vmem>>, vector<8x128xf32>
    %cst_42 = arith.constant dense<0.000000e+00> : vector<8x128xf32>
    %174 = tpu.matmul %169, %27, %cst_42 {dimension_numbers = #tpu.dot_dimension_numbers<[1], [0], [0], [1], [0, 0, 1, 1], [], []>} : vector<8x32xf32>, vector<32x128xf32>, vector<8x128xf32> -> vector<8x128xf32>
    %175 = arith.addf %173, %174 : vector<8x128xf32>
    %176 = math.tanh %175 : vector<8x128xf32>
    %177 = vector.broadcast %11 : vector<1x128xf32> to vector<8x128xf32>
    %178 = arith.mulf %176, %177 : vector<8x128xf32>
    %179 = vector.broadcast %14 : vector<1x128xf32> to vector<8x128xf32>
    %180 = arith.addf %178, %179 : vector<8x128xf32>
    %181 = vector.extract_strided_slice %180 {offsets = [0, 0], sizes = [8, 32], strides = [1, 1]} : vector<8x128xf32> to vector<8x32xf32>
    %182 = vector.extract_strided_slice %180 {offsets = [0, 32], sizes = [8, 32], strides = [1, 1]} : vector<8x128xf32> to vector<8x32xf32>
    %183 = vector.extract_strided_slice %180 {offsets = [0, 64], sizes = [8, 32], strides = [1, 1]} : vector<8x128xf32> to vector<8x32xf32>
    %184 = vector.extract_strided_slice %180 {offsets = [0, 96], sizes = [8, 32], strides = [1, 1]} : vector<8x128xf32> to vector<8x32xf32>
    %185 = arith.mulf %182, %167 : vector<8x32xf32>
    %186 = arith.mulf %181, %183 : vector<8x32xf32>
    %187 = arith.addf %185, %186 : vector<8x32xf32>
    %188 = math.tanh %187 : vector<8x32xf32>
    %189 = arith.mulf %184, %188 : vector<8x32xf32>
    %c8_i32_43 = arith.constant 8 : i32
    %c0_44 = arith.constant 0 : index
    %c0_45 = arith.constant 0 : index
    %190 = vector.load %arg10[%c0_44, %c0_45] : memref<8x32xf32, #tpu.memory_space<vmem>>, vector<8x32xf32>
    tpu.vector_store %arg10[%c0_44, %c0_45], %189 {strides = array<i32>} : memref<8x32xf32, #tpu.memory_space<vmem>>, vector<8x32xf32>,
    %c0_46 = arith.constant 0 : index
    %c0_47 = arith.constant 0 : index
    %191 = vector.load %arg11[%c0_46, %c0_47] : memref<8x32xf32, #tpu.memory_space<vmem>>, vector<8x32xf32>
    tpu.vector_store %arg11[%c0_46, %c0_47], %187 {strides = array<i32>} : memref<8x32xf32, #tpu.memory_space<vmem>>, vector<8x32xf32>,
    %c0_i32_48 = arith.constant 0 : i32
    %192 = arith.cmpi eq, %arg0, %c0_i32_48 : i32
    %193 = arith.extui %192 : i1 to i32
    %c0_i32_49 = arith.constant 0 : i32
    %194 = arith.cmpi ne, %193, %c0_i32_49 : i32
    scf.if %194 {
      %c0_50 = arith.constant 0 : index
      %c0_51 = arith.constant 0 : index
      %195 = vector.load %arg10[%c0_50, %c0_51] : memref<8x32xf32, #tpu.memory_space<vmem>>, vector<8x32xf32>
      %196 = tpu.iota {dimensions = array<i32: 0>} : vector<8x32xi32>
      %c2_i32_52 = arith.constant 2 : i32
      %197 = vector.broadcast %c2_i32_52 : i32 to vector<8x32xi32>
      %198 = arith.cmpi slt, %196, %197 : vector<8x32xi32>
      %cst_53 = arith.constant 0.000000e+00 : f32
      %199 = vector.broadcast %cst_53 : f32 to vector<8x32xf32>
      %200 = arith.select %198, %195, %199 : vector<8x32xi1>, vector<8x32xf32>
      %cst_54 = arith.constant dense<0.000000e+00> : vector<32xf32>
      %201 = vector.multi_reduction <add>, %200, %cst_54 [0] : vector<8x32xf32> to vector<32xf32>
      %202 = vector.shape_cast %201 : vector<32xf32> to vector<1x32xf32>
      %cst_55 = arith.constant 5.000000e-01 : f32
      %203 = vector.broadcast %cst_55 : f32 to vector<1x32xf32>
      %204 = arith.mulf %202, %203 : vector<1x32xf32>
      %205 = vector.broadcast %204 : vector<1x32xf32> to vector<8x32xf32>
      %206 = arith.subf %195, %205 : vector<8x32xf32>
      %207 = arith.mulf %206, %206 : vector<8x32xf32>
      %cst_56 = arith.constant 0.000000e+00 : f32
      %208 = vector.broadcast %cst_56 : f32 to vector<8x32xf32>
      %209 = arith.select %198, %207, %208 : vector<8x32xi1>, vector<8x32xf32>
      %cst_57 = arith.constant dense<0.000000e+00> : vector<32xf32>
      %210 = vector.multi_reduction <add>, %209, %cst_57 [0] : vector<8x32xf32> to vector<32xf32>
      %211 = vector.shape_cast %210 : vector<32xf32> to vector<1x32xf32>
      %cst_58 = arith.constant 5.000000e-01 : f32
      %212 = vector.broadcast %cst_58 : f32 to vector<1x32xf32>
      %213 = arith.mulf %211, %212 : vector<1x32xf32>
      %214 = vector.broadcast %204 : vector<1x32xf32> to vector<8x32xf32>
      %215 = arith.subf %195, %214 : vector<8x32xf32>
      %cst_59 = arith.constant 9.99999974E-6 : f32
      %216 = vector.broadcast %cst_59 : f32 to vector<1x32xf32>
      %217 = arith.addf %213, %216 : vector<1x32xf32>
      %218 = math.rsqrt %217 : vector<1x32xf32>
      %219 = vector.broadcast %218 : vector<1x32xf32> to vector<8x32xf32>
      %220 = arith.mulf %215, %219 : vector<8x32xf32>
      %c0_60 = arith.constant 0 : index
      %c0_61 = arith.constant 0 : index
      %221 = vector.load %arg5[%c0_60, %c0_61] : memref<1x32xf32, #tpu.memory_space<vmem>>, vector<1x32xf32>
      %222 = vector.broadcast %221 : vector<1x32xf32> to vector<8x32xf32>
      %223 = arith.mulf %220, %222 : vector<8x32xf32>
      %c0_62 = arith.constant 0 : index
      %c0_63 = arith.constant 0 : index
      %224 = vector.load %arg6[%c0_62, %c0_63] : memref<1x32xf32, #tpu.memory_space<vmem>>, vector<1x32xf32>
      %225 = vector.broadcast %224 : vector<1x32xf32> to vector<8x32xf32>
      %226 = arith.addf %223, %225 : vector<8x32xf32>
      %c0_64 = arith.constant 0 : index
      %c0_65 = arith.constant 0 : index
      %227 = vector.load %arg7[%c0_64, %c0_65] : memref<32x128xf32, #tpu.memory_space<vmem>>, vector<32x128xf32>
      %cst_66 = arith.constant dense<0.000000e+00> : vector<8x128xf32>
      %228 = tpu.matmul %226, %227, %cst_66 {dimension_numbers = #tpu.dot_dimension_numbers<[1], [0], [0], [1], [0, 0, 1, 1], [], []>} : vector<8x32xf32>, vector<32x128xf32>, vector<8x128xf32> -> vector<8x128xf32>
      %c0_67 = arith.constant 0 : index
      %c0_68 = arith.constant 0 : index
      %229 = vector.load %arg8[%c0_67, %c0_68] : memref<1x128xf32, #tpu.memory_space<vmem>>, vector<1x128xf32>
      %230 = vector.broadcast %229 : vector<1x128xf32> to vector<8x128xf32>
      %231 = arith.addf %228, %230 : vector<8x128xf32>
      %232 = arith.negf %231 : vector<8x128xf32>
      %233 = math.exp %232 : vector<8x128xf32>
      %cst_69 = arith.constant 1.000000e+00 : f32
      %234 = vector.broadcast %cst_69 : f32 to vector<8x128xf32>
      %235 = arith.addf %234, %233 : vector<8x128xf32>
      %236 = arith.divf %234, %235 : vector<8x128xf32>
      %c0_70 = arith.constant 0 : index
      %c0_71 = arith.constant 0 : index
      %237 = vector.load %arg9[%c0_70, %c0_71] : memref<8x128xf32, #tpu.memory_space<vmem>>, vector<8x128xf32>
      tpu.vector_store %arg9[%c0_70, %c0_71], %236 {strides = array<i32>} : memref<8x128xf32, #tpu.memory_space<vmem>>, vector<8x128xf32>,
    } else {
    }
    return
  }
  func.func @transform_0(%arg0: i32) -> (i32, i32, i32) {
    %c0_i32 = arith.constant 0 : i32
    %c0_i32_0 = arith.constant 0 : i32
    %c0_i32_1 = arith.constant 0 : i32
    return %arg0, %c0_i32, %c0_i32_0 : i32, i32, i32
  }
  func.func @transform_1(%arg0: i32) -> (i32, i32) {
    %c0_i32 = arith.constant 0 : i32
    %c0_i32_0 = arith.constant 0 : i32
    %c0_i32_1 = arith.constant 0 : i32
    return %c0_i32, %c0_i32_0 : i32, i32
  }
  func.func @transform_2(%arg0: i32) -> (i32, i32) {
    %c0_i32 = arith.constant 0 : i32
    %c0_i32_0 = arith.constant 0 : i32
    %c0_i32_1 = arith.constant 0 : i32
    return %c0_i32, %c0_i32_0 : i32, i32
  }
  func.func @transform_3(%arg0: i32) -> (i32, i32) {
    %c0_i32 = arith.constant 0 : i32
    %c0_i32_0 = arith.constant 0 : i32
    %c0_i32_1 = arith.constant 0 : i32
    return %c0_i32, %c0_i32_0 : i32, i32
  }
  func.func @transform_4(%arg0: i32) -> (i32, i32) {
    %c0_i32 = arith.constant 0 : i32
    %c0_i32_0 = arith.constant 0 : i32
    %c0_i32_1 = arith.constant 0 : i32
    return %c0_i32, %c0_i32_0 : i32, i32
  }
  func.func @transform_5(%arg0: i32) -> (i32, i32) {
    %c0_i32 = arith.constant 0 : i32
    %c0_i32_0 = arith.constant 0 : i32
    %c0_i32_1 = arith.constant 0 : i32
    return %c0_i32, %c0_i32_0 : i32, i32
  }
  func.func @transform_6(%arg0: i32) -> (i32, i32) {
    %c0_i32 = arith.constant 0 : i32
    %c0_i32_0 = arith.constant 0 : i32
    %c0_i32_1 = arith.constant 0 : i32
    return %c0_i32, %c0_i32_0 : i32, i32
  }
  func.func @transform_7(%arg0: i32) -> (i32, i32) {
    %c0_i32 = arith.constant 0 : i32
    %c0_i32_0 = arith.constant 0 : i32
    %c0_i32_1 = arith.constant 0 : i32
    return %c0_i32, %c0_i32_0 : i32, i32
  }
  func.func @transform_8(%arg0: i32) -> (i32, i32) {
    %c0_i32 = arith.constant 0 : i32
    %c0_i32_0 = arith.constant 0 : i32
    %c0_i32_1 = arith.constant 0 : i32
    return %c0_i32, %c0_i32_0 : i32, i32
  }
}

</mosaic_0001>

<bundles_post_ra>
// kernel: tpu_custom_call.1
= control target key start
LH: loop header
LB: loop body
LE: loop exit
PB: predicated region body
PF: predicated region fallthrough
CT: control target
= control target key end

     0   :  { %13 = vsyncpa [#allocation6], 0  ;;  %s2010_s0 = inlined_call_operand.hbm [shape: f32[8,8,128], index: 0, kind: input, shape index: {}]   ;;  %s2011_s1 = inlined_call_operand.hbm [shape: f32[128,128], index: 1, kind: input, shape index: {}]   ;;  %s2012_s2 = inlined_call_operand.hbm [shape: f32[32,128], index: 2, kind: input, shape index: {}]   ;;  %s2013_s3 = inlined_call_operand.vmem [shape: f32[1,128], index: 3, kind: input, shape index: {}]   ;;  %s2014_s4 = inlined_call_operand.vmem [shape: f32[1,32], index: 4, kind: input, shape index: {}]   ;;  %s2015_s5 = inlined_call_operand.vmem [shape: f32[1,32], index: 5, kind: input, shape index: {}]   ;;  %s2016_s6 = inlined_call_operand.hbm [shape: f32[32,128], index: 6, kind: input, shape index: {}]   ;;  %s2017_s7 = inlined_call_operand.vmem [shape: f32[1,128], index: 7, kind: input, shape index: {}]   ;;  %s2018_s8 = inlined_call_operand.hbm [shape: f32[8,128], index: 8, kind: output, shape index: {}]  }
   0x1   :  { %14 = vsyncpa [#allocation9], 0 }
   0x2   :  { %15 = vsyncpa [#allocation12], 0 }
   0x3   :  { %16 = vsyncpa [#allocation7], 0  ;;  %s1693_s27 = smov [#allocation8]   ;;  %s1694_s29 = smov [#allocation5]  }
   0x4   :  { %s34_s28 = sshll.u32 %s1693_s27, 4  ;;  %s22_s30 = sshll.u32 %s1694_s29, 4  ;;  %s35_s28 = int_to_ptr.vmem [resolvable:$true] %s34_s28  ;;  %s1752_s30 = int_to_ptr.vmem [resolvable:$true] %s22_s30 }
   0x5   :  { %s1575_s11 = scalar_lea.hbm %s2011_s1, 2048 }
   0x6   :  { %p1576_p0 = scmp.ne.s32.totalorder %s2011_s1, %s1575_s11  ;;  %p1579_p1 = scmp.lt.u32.totalorder %s1575_s11, %s2011_s1 }
   0x8   :  { %p1581_p2 = pnand %p1579_p1, %p1576_p0 }
   0xa   :  { %1584 = shalt.err (!%p1581_p2)
}
   0xb   :  { %s1585_s16 = scalar_lea.vmem %s35_s28, 2048  ;;  %p1590_p4 = scmp.lt.s32.totalorder %s35_s28, %s35_s28 }
   0xc   :  { %p1586_p3 = scmp.ne.s32.totalorder %s35_s28, %s1585_s16  ;;  %p1591_p5 = scmp.lt.s32.totalorder %s1585_s16, %s1585_s16 }
   0xe   :  { %p1592_p6 = por %p1591_p5, %p1590_p4 }
  0x10   :  { %p1593_p7 = pnand %p1592_p6, %p1586_p3 }
  0x12   :  { %1596 = shalt.err (!%p1593_p7)
}
  0x13   :  { %s1695_s17 = smov 128   ;;  %s1696_s18 = smov 8  }
  0x14   :  { %40 = dma.hbm_to_vmem [thread:$0]  %s2011_s1, 2048, %s35_s28, [#allocation9], %s1695_s17, %s1695_s17, %s1696_s18  }
  0x15   :  { %s1597_s23 = scalar_lea.hbm %s2010_s0, 1024 }
  0x16   :  { %p1598_p8 = scmp.ne.s32.totalorder %s2010_s0, %s1597_s23  ;;  %p1601_p9 = scmp.lt.u32.totalorder %s1597_s23, %s2010_s0 }
  0x18   :  { %p1603_p10 = pnand %p1601_p9, %p1598_p8 }
  0x1a   :  { %1606 = shalt.err (!%p1603_p10)
}
  0x1b   :  { %s1607_s29 = scalar_lea.vmem %s1752_s30, 1024  ;;  %p1612_p12 = scmp.lt.s32.totalorder %s1752_s30, %s1752_s30 }
  0x1c   :  { %p1608_p11 = scmp.ne.s32.totalorder %s1752_s30, %s1607_s29  ;;  %p1613_p13 = scmp.lt.s32.totalorder %s1607_s29, %s1607_s29 }
  0x1e   :  { %p1614_p0 = por %p1613_p13, %p1612_p12 }
  0x20   :  { %p1615_p1 = pnand %p1614_p0, %p1608_p11 }
  0x22   :  { %1618 = shalt.err (!%p1615_p1)
}
  0x23   :  { %28 = dma.hbm_to_vmem [thread:$0]  %s2010_s0, 1024, %s1752_s30, [#allocation6], %s1695_s17, %s1695_s17, %s1696_s18  }
  0x24   :  { %s1697_s9 = smov [#allocation10]   ;;  %s1698_s11 = smov [#allocation11]  }
  0x25   :  { %s46_s10 = sshll.u32 %s1697_s9, 4  ;;  %s64_s12 = sshll.u32 %s1698_s11, 4  ;;  %s47_s10 = int_to_ptr.vmem [resolvable:$true] %s46_s10  ;;  %s1789_s12 = int_to_ptr.vmem [resolvable:$true] %s64_s12 }
  0x26   :  { %s1619_s15 = scalar_lea.hbm %s2012_s2, 512 }
  0x27   :  { %p1620_p2 = scmp.ne.s32.totalorder %s2012_s2, %s1619_s15  ;;  %p1623_p3 = scmp.lt.u32.totalorder %s1619_s15, %s2012_s2 }
  0x29   :  { %p1625_p4 = pnand %p1623_p3, %p1620_p2 }
  0x2b   :  { %1628 = shalt.err (!%p1625_p4)
}
  0x2c   :  { %s1629_s0 = scalar_lea.vmem %s47_s10, 512  ;;  %p1634_p6 = scmp.lt.s32.totalorder %s47_s10, %s47_s10 }
  0x2d   :  { %p1630_p5 = scmp.ne.s32.totalorder %s47_s10, %s1629_s0  ;;  %p1635_p7 = scmp.lt.s32.totalorder %s1629_s0, %s1629_s0 }
  0x2f   :  { %p1636_p8 = por %p1635_p7, %p1634_p6 }
  0x31   :  { %p1637_p9 = pnand %p1636_p8, %p1630_p5 }
  0x33   :  { %1640 = shalt.err (!%p1637_p9)
}
  0x34   :  { %52 = dma.hbm_to_vmem [thread:$0]  %s2012_s2, 512, %s47_s10, [#allocation9], %s1695_s17, %s1695_s17, %s1696_s18  }
  0x35   :  { %s1641_s25 = scalar_lea.hbm %s2016_s6, 512 }
  0x36   :  { %p1642_p10 = scmp.ne.s32.totalorder %s2016_s6, %s1641_s25  ;;  %p1645_p11 = scmp.lt.u32.totalorder %s1641_s25, %s2016_s6 }
  0x38   :  { %p1647_p12 = pnand %p1645_p11, %p1642_p10 }
  0x3a   :  { %1650 = shalt.err (!%p1647_p12)
}
  0x3b   :  { %s1651_s28 = scalar_lea.vmem %s1789_s12, 512  ;;  %p1656_p0 = scmp.lt.s32.totalorder %s1789_s12, %s1789_s12 }
  0x3c   :  { %p1652_p13 = scmp.ne.s32.totalorder %s1789_s12, %s1651_s28  ;;  %p1657_p1 = scmp.lt.s32.totalorder %s1651_s28, %s1651_s28 }
  0x3e   :  { %p1658_p2 = por %p1657_p1, %p1656_p0 }
  0x40   :  { %p1659_p3 = pnand %p1658_p2, %p1652_p13 }
  0x42   :  { %1662 = shalt.err (!%p1659_p3)
}
  0x43   :  { %70 = dma.hbm_to_vmem [thread:$0]  %s2016_s6, 512, %s1789_s12, [#allocation12], %s1695_s17, %s1695_s17, %s1696_s18  }
  0x44   :  { %1685 = dma.done.wait [#allocation6], 1024  }
  0x45   :  { %1686 = vsyncadd [#allocation6], 4294966272 }
  0x46   :  { %1687 = dma.done.wait [#allocation9], 2560  }
  0x47   :  { %1688 = vsyncadd [#allocation9], 4294964736 }
  0x48   :  { %1689 = dma.done.wait [#allocation12], 512  }
  0x49   :  { %1690 = vsyncadd [#allocation12], 4294966784  ;;  %v92_v0 = vlaneseq  ;;  %v1699_v1 = vmov 0.0|0.0   ;;  %vm89_vm0 = vcmask 261120   ;;  %vm1700_vm1 = vmmov 0   ;;  %v107_v5 = vld [vmem:[#allocation8] sm:$0xff] }
  0x4a   :  { %1469 = vmatprep.subr.bf16.mxu1 %v1699_v1  ;;  %v1701_v3 = vmov 0.0   ;;  %v108_v6 = vld [vmem:[#allocation8 + $0x8] sm:$0xff]  ;;  %v109_v7 = vld [vmem:[#allocation8 + $0x10] sm:$0xff]  ;;  %v110_v9 = vld [vmem:[#allocation8 + $0x18] sm:$0xff]  ;;  %v1702_v13 = vmov 0.5   ;;  %s1704_s18 = smov 32  }
  0x4b   :  { %v93_v2 = vand.u32 127, %v92_v0  ;;  %1346 = vmatprep.mubr.msk.f32.mxu1 %vm1700_vm1, %v1701_v3  ;;  %90 = vst.msk [vmem:[#allocation2] sm:$0xff] %vm89_vm0, %v1701_v3  ;;  %91 = vst.msk [vmem:[#allocation3] sm:$0xff] %vm89_vm0, %v1701_v3  ;;  %v1437_v8 = vpack.c.bf16 %v108_v6, %v107_v5  ;;  %v1441_v10 = vpack.c.bf16 %v110_v9, %v109_v7  ;;  %v111_v11 = vld [vmem:[#allocation8 + $0x20] sm:$0xff]  ;;  %v112_v12 = vld [vmem:[#allocation8 + $0x28] sm:$0xff]  ;;  %s1705_s10 = smov 96  }
  0x4c   :  { %v1445_v15 = vpack.c.bf16 %v112_v12, %v111_v11  ;;  %v113_v16 = vld [vmem:[#allocation8 + $0x30] sm:$0xff]  ;;  %v251_v17 = vld [vmem:[#allocation10] sm:$0xff]  ;;  %v252_v18 = vld [vmem:[#allocation10 + $0x8] sm:$0xff] }
  0x4d   :  { %vm94_vm2 = vcmp.ge.s32.totalorder %v93_v2, 64  ;;  %vm95_vm3 = vcmp.lt.s32.totalorder %v93_v2, 96  ;;  %1438 = vmatprep.subr.bf16.mxu0 %v1437_v8  ;;  %v114_v19 = vld [vmem:[#allocation8 + $0x38] sm:$0xff]  ;;  %v99_v22 = vld [vmem:[#allocation5] sm:$0xff]  ;;  %v253_v23 = vld [vmem:[#allocation10 + $0x10] sm:$0xff] }
  0x4e   :  { %vm1834_vm4 = vmand %vm94_vm2, %vm95_vm3  ;;  %1440 = vmatpush3.bf16.msra.mxu0 %v1437_v8  ;;  %1326 = vmatprep.mubr.f32.mxu0 %v99_v22  ;;  %v254_v24 = vld [vmem:[#allocation10 + $0x18] sm:$0xff]  ;;  %v1449_v28 = vpack.c.bf16 %v114_v19, %v113_v16  ;;  %v115_v29 = vld [vmem:[#allocation8 + $0x40] sm:$0xff] }
  0x4f   :  { %v1841_v14 = vsel %vm1834_vm4, 1.0, %v1702_v13  ;;  %1442 = vmatprep.subr.bf16.mxu0 %v1441_v10  ;;  %v116_v30 = vld [vmem:[#allocation8 + $0x48] sm:$0xff]  ;;  %v117_v33 = vld [vmem:[#allocation8 + $0x50] sm:$0xff]  ;;  %v118_v34 = vld [vmem:[#allocation8 + $0x58] sm:$0xff]  ;;  %v1877_v53 = vsel %vm1834_vm4, 0.0, %v1702_v13 }
  0x50   :  { %v255_v20 = vmul.f32 %v251_v17, %v1841_v14  ;;  %v256_v21 = vmul.f32 %v252_v18, %v1841_v14  ;;  %v257_v25 = vmul.f32 %v253_v23, %v1841_v14  ;;  %v258_v27 = vmul.f32 %v254_v24, %v1841_v14  ;;  %v119_v37 = vld [vmem:[#allocation8 + $0x60] sm:$0xff]  ;;  %v120_v38 = vld [vmem:[#allocation8 + $0x68] sm:$0xff]  ;;  %v121_v40 = vld [vmem:[#allocation8 + $0x70] sm:$0xff] }
  0x51   :  { %v1453_v32 = vpack.c.bf16 %v116_v30, %v115_v29  ;;  %v1457_v36 = vpack.c.bf16 %v118_v34, %v117_v33  ;;  %v1461_v39 = vpack.c.bf16 %v120_v38, %v119_v37  ;;  %v122_v41 = vld [vmem:[#allocation8 + $0x78] sm:$0xff]  ;;  %v100_v43 = vld [vmem:[#allocation5 + $0x8] sm:$0xff]  ;;  %v1870_v46 = vld [vmem:[%s2013_s3] ss:$0 sm:$0xff]  ;;  %s1703_s3 = smov 64  }
  0x52   :  { %1444 = vmatpush3.bf16.msra.mxu0 %v1441_v10  ;;  %v1846_v26 = vpack.c.bf16 %v256_v21, %v255_v20  ;;  %v1850_v31 = vpack.c.bf16 %v258_v27, %v257_v25  ;;  %v259_v35 = vld [vmem:[#allocation2] sm:$0xff]  ;;  %v1465_v42 = vpack.c.bf16 %v122_v41, %v121_v40  ;;  %v260_v56 = vld [vmem:[#allocation3] sm:$0xff] }
  0x53   :  { %1446 = vmatprep.subr.bf16.mxu0 %v1445_v15  ;;  %v101_v20 = vld [vmem:[#allocation5 + $0x10] sm:$0xff]  ;;  %v102_v21 = vld [vmem:[#allocation5 + $0x18] sm:$0xff] }
  0x54   :  { %1471 = vmatpush3.bf16.msra.mxu1 %v1846_v26 }
  0x55   :  { %1472 = vmatprep.subr.bf16.mxu1 %v1699_v1 }
  0x56   :  { %1448 = vmatpush3.bf16.msra.mxu0 %v1445_v15 }
  0x57   :  { %1450 = vmatprep.subr.bf16.mxu0 %v1449_v28 }
  0x58   :  { %1474 = vmatpush3.bf16.msra.mxu1 %v1850_v31 }
  0x59   :  { %1475 = vmatprep.subr.bf16.mxu1 %v1699_v1 }
  0x5a   :  { %1452 = vmatpush3.bf16.msra.mxu0 %v1449_v28 }
  0x5b   :  { %1454 = vmatprep.subr.bf16.mxu0 %v1453_v32  ;;  %1347 = vmatmul.mubr.msk.f32.vlgmr.msra.gmra.mrb[0].mxu1 %vm89_vm0, %v259_v35 }
  0x5c   :  { %1477 = vmatpush3.bf16.msra.mxu1 %v1846_v26  ;;  %1357 = vmatprep.mubr.msk.f32.mxu1 %vm1700_vm1, %v1701_v3 }
  0x5d   :  { %1478 = vmatprep.subr.bf16.mxu1 %v1699_v1 }
  0x5e   :  { %1456 = vmatpush3.bf16.msra.mxu0 %v1453_v32 }
  0x5f   :  { %1458 = vmatprep.subr.bf16.mxu0 %v1457_v36 }
  0x60   :  { %1480 = vmatpush3.bf16.msra.mxu1 %v1850_v31 }
  0x61   :  { %1481 = vmatprep.subr.bf16.mxu1 %v1699_v1 }
  0x62   :  { %1460 = vmatpush3.bf16.msra.mxu0 %v1457_v36 }
  0x63   :  { %1462 = vmatprep.subr.bf16.mxu0 %v1461_v39 }
  0x66   :  { %1464 = vmatpush3.bf16.msra.mxu0 %v1461_v39 }
  0x67   :  { %1466 = vmatprep.subr.bf16.mxu0 %v1465_v42 }
  0x6a   :  { %1468 = vmatpush3.bf16.msra.mxu0 %v1465_v42 }
  0x6b   :  { %1499 = vmatprep.subr.bf16.mxu0 %v1699_v1 }
  0x6d   :  { %1327 = vmatmul.mubr.f32.vlgmr.msra.gmra.mrb[0].mxu0 %v100_v43 }
  0x6e   :  { %1501 = vmatpush3.bf16.msra.mxu0 %v1846_v26  ;;  %1329 = vmatprep.mubr.f32.mxu0 %v101_v20 }
  0x6f   :  { %1502 = vmatprep.subr.bf16.mxu0 %v1699_v1 }
  0x71   :  { %1330 = vmatmul.mubr.f32.gmra.mrb[2].mxu0 %v102_v21 }
  0x72   :  { %1504 = vmatpush3.bf16.msra.mxu0 %v1850_v31 }
  0x73   :  { %1511 = vmatprep.subr.bf16.mxu0 %v1699_v1 }
 0x12e   :  { %v332_v44 = vpop.f32.mrb[0].mxu1 }
 0x12f   :  { %v1348_v45 = vpop.f32.mrb[1].mxu1 }
 0x140   :  { %v1328_v47 = vpop.f32.mrb[0].mxu0 }
 0x141   :  { %v196_v48 = vpop.f32.mrb[1].mxu0  ;;  %v202_v6 = vadd.f32 %v1328_v47, %v1870_v46 }
 0x142   :  { %v197_v49 = vadd.f32 %v1870_v46, %v196_v48 }
 0x143   :  { %v236_v7 = vmul.f32 %v202_v6, %v1841_v14 }
 0x144   :  { %v235_v50 = vmul.f32 %v197_v49, %v1841_v14  ;;  %v1331_v25 = vpop.f32.mrb[2].mxu0 }
 0x145   :  { %v206_v27 = vpop.f32.mrb[3].mxu0  ;;  %v212_v48 = vadd.f32 %v1331_v25, %v1870_v46 }
 0x146   :  { %v336_v51 = vadd.f32 %v332_v44, %v235_v50  ;;  %v207_v29 = vadd.f32 %v1870_v46, %v206_v27 }
 0x147   :  { %v238_v49 = vmul.f32 %v212_v48, %v1841_v14 }
 0x148   :  { %1537 = vtanh.f32 %v336_v51  ;;  %v237_v30 = vmul.f32 %v207_v29, %v1841_v14 }
 0x152   :  { %v1538_v52 = vpop.eup %1537 }
 0x153   :  { %v338_v54 = vmul.f32 %v1538_v52, %v1841_v14 }
 0x155   :  { %v339_v55 = vadd.f32 %v338_v54, %v1877_v53 }
 0x157   :  { %346 = vrot.lane.b32.xlu0 %v339_v55, %s1703_s3 }
 0x15b   :  { %341 = vrot.lane.b32.xlu0 %v260_v56, %s1704_s18 }
 0x1c9   :  { %v347_v57 = vpop.permute.xlu0 %346 }
 0x1ca   :  { %v349_v58 = vmul.f32 %v347_v57, %v339_v55 }
 0x1cc   :  { %351 = vrot.lane.b32.xlu1 %v349_v58, %s1704_s18 }
 0x1cd   :  { %v342_v59 = vpop.permute.xlu0 %341 }
 0x1ce   :  { %v344_v60 = vmul.f32 %v342_v59, %v339_v55 }
 0x23e   :  { %v352_v61 = vpop.permute.xlu1 %351 }
 0x23f   :  { %v354_v62 = vadd.f32 %v352_v61, %v344_v60 }
 0x241   :  { %1539 = vtanh.f32 %v354_v62 }
 0x24b   :  { %v1540_v63 = vpop.eup %1539 }
 0x24c   :  { %357 = vrot.lane.b32.xlu1 %v1540_v63, %s1703_s3  ;;  %v104_v63 = vld [vmem:[#allocation5 + $0x28] sm:$0xff] }
 0x2be   :  { %v358_v2 = vpop.permute.xlu1 %357 }
 0x2bf   :  { %v360_v4 = vmul.f32 %v358_v2, %v339_v55 }
 0x2c1   :  { %364 = vrot.lane.b32.xlu0 %v360_v4, %s1704_s18 }
 0x333   :  { %v365_v5 = vpop.permute.xlu0 %364 }
 0x334   :  { %1358 = vmatmul.mubr.msk.f32.vlgmr.msra.gmra.mrb[2].mxu1 %vm89_vm0, %v365_v5 }
 0x335   :  { %1483 = vmatpush3.bf16.msra.mxu1 %v1846_v26  ;;  %1368 = vmatprep.mubr.msk.f32.mxu1 %vm1700_vm1, %v1701_v3 }
 0x336   :  { %1484 = vmatprep.subr.bf16.mxu1 %v1699_v1 }
 0x339   :  { %1486 = vmatpush3.bf16.msra.mxu1 %v1850_v31 }
 0x33a   :  { %1487 = vmatprep.subr.bf16.mxu1 %v1699_v1 }
 0x407   :  { %v434_v8 = vpop.f32.mrb[2].mxu1 }
 0x408   :  { %v438_v9 = vadd.f32 %v434_v8, %v236_v7  ;;  %v1359_v10 = vpop.f32.mrb[3].mxu1 }
 0x40a   :  { %1541 = vtanh.f32 %v438_v9 }
 0x414   :  { %v1542_v11 = vpop.eup %1541 }
 0x415   :  { %v440_v12 = vmul.f32 %v1542_v11, %v1841_v14 }
 0x417   :  { %v441_v13 = vadd.f32 %v440_v12, %v1877_v53 }
 0x419   :  { %444 = vrot.lane.b32.xlu1 %v441_v13, %s1703_s3  ;;  %v442_v17 = vmul.f32 %v441_v13, %v354_v62  ;;  %v103_v62 = vld [vmem:[#allocation5 + $0x20] sm:$0xff] }
 0x41a   :  { %1332 = vmatprep.mubr.f32.mxu0 %v103_v62 }
 0x41b   :  { %1333 = vmatmul.mubr.f32.gmra.mrb[4].mxu0 %v104_v63 }
 0x48b   :  { %v445_v15 = vpop.permute.xlu1 %444 }
 0x48c   :  { %v447_v16 = vmul.f32 %v445_v15, %v441_v13 }
 0x48e   :  { %449 = vrot.lane.b32.xlu0 %v447_v16, %s1704_s18 }
 0x4ee   :  { %v1334_v6 = vpop.f32.mrb[4].mxu0 }
 0x4ef   :  { %v216_v7 = vpop.f32.mrb[5].mxu0 }
 0x4f0   :  { %v217_v9 = vadd.f32 %v1870_v46, %v216_v7 }
 0x4f2   :  { %v239_v10 = vmul.f32 %v217_v9, %v1841_v14 }
 0x500   :  { %v450_v18 = vpop.permute.xlu0 %449 }
 0x501   :  { %v452_v19 = vadd.f32 %v450_v18, %v442_v17 }
 0x503   :  { %1543 = vtanh.f32 %v452_v19 }
 0x50d   :  { %v1544_v22 = vpop.eup %1543 }
 0x50e   :  { %455 = vrot.lane.b32.xlu1 %v1544_v22, %s1703_s3 }
 0x580   :  { %v456_v23 = vpop.permute.xlu1 %455 }
 0x581   :  { %v458_v24 = vmul.f32 %v456_v23, %v441_v13  ;;  %v105_v23 = vld [vmem:[#allocation5 + $0x30] sm:$0xff] }
 0x582   :  { %1335 = vmatprep.mubr.f32.mxu0 %v105_v23 }
 0x583   :  { %462 = vrot.lane.b32.xlu0 %v458_v24, %s1704_s18  ;;  %v106_v24 = vld [vmem:[#allocation5 + $0x38] sm:$0xff] }
 0x584   :  { %1336 = vmatmul.mubr.f32.gmra.mrb[6].mxu0 %v106_v24 }
 0x585   :  { %1401 = vmatprep.mubr.msk.f32.mxu0 %vm1700_vm1, %v1701_v3 }
 0x5f5   :  { %v463_v28 = vpop.permute.xlu0 %462 }
 0x5f6   :  { %1369 = vmatmul.mubr.msk.f32.vlgmr.msra.gmra.mrb[4].mxu1 %vm89_vm0, %v463_v28 }
 0x5f7   :  { %1489 = vmatpush3.bf16.msra.mxu1 %v1846_v26  ;;  %1379 = vmatprep.mubr.msk.f32.mxu1 %vm1700_vm1, %v1701_v3 }
 0x5f8   :  { %1490 = vmatprep.subr.bf16.mxu1 %v1699_v1 }
 0x5fb   :  { %1492 = vmatpush3.bf16.msra.mxu1 %v1850_v31 }
 0x5fc   :  { %1493 = vmatprep.subr.bf16.mxu1 %v1699_v1 }
 0x657   :  { %v1337_v29 = vpop.f32.mrb[6].mxu0 }
 0x6c9   :  { %v532_v32 = vpop.f32.mrb[4].mxu1 }
 0x6ca   :  { %v536_v33 = vadd.f32 %v532_v32, %v237_v30  ;;  %v1370_v34 = vpop.f32.mrb[5].mxu1  ;;  %v226_v30 = vpop.f32.mrb[7].mxu0 }
 0x6cc   :  { %1545 = vtanh.f32 %v536_v33  ;;  %v222_v33 = vadd.f32 %v1334_v6, %v1870_v46 }
 0x6ce   :  { %v240_v34 = vmul.f32 %v222_v33, %v1841_v14 }
 0x6d6   :  { %v1546_v35 = vpop.eup %1545 }
 0x6d7   :  { %v538_v36 = vmul.f32 %v1546_v35, %v1841_v14 }
 0x6d9   :  { %v539_v37 = vadd.f32 %v538_v36, %v1877_v53 }
 0x6db   :  { %542 = vrot.lane.b32.xlu1 %v539_v37, %s1703_s3  ;;  %v540_v40 = vmul.f32 %v539_v37, %v452_v19 }
 0x74d   :  { %v543_v38 = vpop.permute.xlu1 %542 }
 0x74e   :  { %v545_v39 = vmul.f32 %v543_v38, %v539_v37 }
 0x750   :  { %547 = vrot.lane.b32.xlu0 %v545_v39, %s1704_s18 }
 0x7c2   :  { %v548_v41 = vpop.permute.xlu0 %547 }
 0x7c3   :  { %v550_v42 = vadd.f32 %v548_v41, %v540_v40 }
 0x7c5   :  { %1547 = vtanh.f32 %v550_v42 }
 0x7cf   :  { %v1548_v43 = vpop.eup %1547 }
 0x7d0   :  { %553 = vrot.lane.b32.xlu1 %v1548_v43, %s1703_s3 }
 0x842   :  { %v554_v44 = vpop.permute.xlu1 %553 }
 0x843   :  { %v556_v45 = vmul.f32 %v554_v44, %v539_v37 }
 0x845   :  { %560 = vrot.lane.b32.xlu0 %v556_v45, %s1704_s18 }
 0x8b7   :  { %v561_v47 = vpop.permute.xlu0 %560 }
 0x8b8   :  { %1380 = vmatmul.mubr.msk.f32.vlgmr.msra.gmra.mrb[6].mxu1 %vm89_vm0, %v561_v47 }
 0x8b9   :  { %1495 = vmatpush3.bf16.msra.mxu1 %v1846_v26  ;;  %1390 = vmatprep.mubr.msk.f32.mxu1 %vm1700_vm1, %v1701_v3 }
 0x8ba   :  { %1496 = vmatprep.subr.bf16.mxu1 %v1699_v1 }
 0x8bd   :  { %1498 = vmatpush3.bf16.msra.mxu1 %v1850_v31 }
 0x8be   :  { %1505 = vmatprep.subr.bf16.mxu1 %v1699_v1 }
 0x98b   :  { %v630_v50 = vpop.f32.mrb[6].mxu1 }
 0x98c   :  { %v634_v51 = vadd.f32 %v630_v50, %v238_v49  ;;  %v1381_v52 = vpop.f32.mrb[7].mxu1  ;;  %v227_v49 = vadd.f32 %v1870_v46, %v226_v30 }
 0x98e   :  { %1549 = vtanh.f32 %v634_v51  ;;  %v241_v50 = vmul.f32 %v227_v49, %v1841_v14 }
 0x998   :  { %v1550_v54 = vpop.eup %1549 }
 0x999   :  { %v636_v55 = vmul.f32 %v1550_v54, %v1841_v14 }
 0x99b   :  { %v637_v56 = vadd.f32 %v636_v55, %v1877_v53 }
 0x99d   :  { %640 = vrot.lane.b32.xlu1 %v637_v56, %s1703_s3  ;;  %v638_v59 = vmul.f32 %v637_v56, %v550_v42 }
 0xa0f   :  { %v641_v57 = vpop.permute.xlu1 %640 }
 0xa10   :  { %v643_v58 = vmul.f32 %v641_v57, %v637_v56 }
 0xa12   :  { %645 = vrot.lane.b32.xlu0 %v643_v58, %s1704_s18 }
 0xa84   :  { %v646_v60 = vpop.permute.xlu0 %645 }
 0xa85   :  { %v648_v61 = vadd.f32 %v646_v60, %v638_v59 }
 0xa87   :  { %1551 = vtanh.f32 %v648_v61 }
 0xa91   :  { %v1552_v2 = vpop.eup %1551 }
 0xa92   :  { %651 = vrot.lane.b32.xlu1 %v1552_v2, %s1703_s3 }
 0xb04   :  { %v652_v4 = vpop.permute.xlu1 %651 }
 0xb05   :  { %v654_v5 = vmul.f32 %v652_v4, %v637_v56 }
 0xb07   :  { %658 = vrot.lane.b32.xlu0 %v654_v5, %s1704_s18  ;;  %v232_v5 = vadd.f32 %v1337_v29, %v1870_v46 }
 0xb09   :  { %v242_v6 = vmul.f32 %v232_v5, %v1841_v14 }
 0xb79   :  { %v659_v8 = vpop.permute.xlu0 %658 }
 0xb7a   :  { %1391 = vmatmul.mubr.msk.f32.vlgmr.msra.gmra.mrb[8].mxu1 %vm89_vm0, %v659_v8 }
 0xb7b   :  { %1507 = vmatpush3.bf16.msra.mxu1 %v1846_v26  ;;  %1412 = vmatprep.mubr.msk.f32.mxu1 %vm1700_vm1, %v1701_v3 }
 0xb7c   :  { %1508 = vmatprep.subr.bf16.mxu1 %v1699_v1 }
 0xb7f   :  { %1510 = vmatpush3.bf16.msra.mxu1 %v1850_v31 }
 0xb80   :  { %1517 = vmatprep.subr.bf16.mxu1 %v1699_v1 }
 0xc4d   :  { %v728_v11 = vpop.f32.mrb[8].mxu1 }
 0xc4e   :  { %v732_v12 = vadd.f32 %v728_v11, %v239_v10  ;;  %v1392_v13 = vpop.f32.mrb[9].mxu1 }
 0xc50   :  { %1553 = vtanh.f32 %v732_v12 }
 0xc5a   :  { %v1554_v15 = vpop.eup %1553 }
 0xc5b   :  { %v734_v16 = vmul.f32 %v1554_v15, %v1841_v14 }
 0xc5d   :  { %v735_v17 = vadd.f32 %v734_v16, %v1877_v53 }
 0xc5f   :  { %738 = vrot.lane.b32.xlu1 %v735_v17, %s1703_s3  ;;  %v736_v20 = vmul.f32 %v735_v17, %v648_v61 }
 0xcd1   :  { %v739_v18 = vpop.permute.xlu1 %738 }
 0xcd2   :  { %v741_v19 = vmul.f32 %v739_v18, %v735_v17 }
 0xcd4   :  { %743 = vrot.lane.b32.xlu0 %v741_v19, %s1704_s18  ;;  %v1103_v19 = vld [vmem:[#allocation11] sm:$0xff] }
 0xd46   :  { %v744_v21 = vpop.permute.xlu0 %743 }
 0xd47   :  { %v746_v22 = vadd.f32 %v744_v21, %v736_v20  ;;  %v1104_v20 = vld [vmem:[#allocation11 + $0x8] sm:$0xff] }
 0xd48   :  { %v1518_v21 = vpack.c.bf16 %v1104_v20, %v1103_v19 }
 0xd49   :  { %1555 = vtanh.f32 %v746_v22 }
 0xd53   :  { %v1556_v25 = vpop.eup %1555 }
 0xd54   :  { %749 = vrot.lane.b32.xlu1 %v1556_v25, %s1703_s3 }
 0xdc6   :  { %v750_v27 = vpop.permute.xlu1 %749 }
 0xdc7   :  { %v752_v28 = vmul.f32 %v750_v27, %v735_v17 }
 0xdc9   :  { %756 = vrot.lane.b32.xlu0 %v752_v28, %s1704_s18  ;;  %v1062_v28 = vshrl.u32 %v92_v0, 7 }
 0xdcb   :  { %vm1063_vm5 = vcmp.lt.s32.totalorder %v1062_v28, 2 }
 0xe3b   :  { %v757_v32 = vpop.permute.xlu0 %756 }
 0xe3c   :  { %1402 = vmatmul.mubr.msk.f32.vlgmr.msra.gmra.mrb[8].mxu0 %vm89_vm0, %v757_v32 }
 0xe3d   :  { %1513 = vmatpush3.bf16.msra.mxu0 %v1846_v26  ;;  %1423 = vmatprep.mubr.msk.f32.mxu0 %vm1700_vm1, %v1701_v3 }
 0xe3e   :  { %1514 = vmatprep.subr.bf16.mxu0 %v1699_v1 }
 0xe41   :  { %1516 = vmatpush3.bf16.msra.mxu0 %v1850_v31 }
 0xf0f   :  { %v826_v35 = vpop.f32.mrb[8].mxu0 }
 0xf10   :  { %v830_v36 = vadd.f32 %v826_v35, %v240_v34  ;;  %v1403_v37 = vpop.f32.mrb[9].mxu0 }
 0xf12   :  { %1557 = vtanh.f32 %v830_v36 }
 0xf1c   :  { %v1558_v38 = vpop.eup %1557 }
 0xf1d   :  { %v832_v39 = vmul.f32 %v1558_v38, %v1841_v14 }
 0xf1f   :  { %v833_v26 = vadd.f32 %v832_v39, %v1877_v53 }
 0xf21   :  { %836 = vrot.lane.b32.xlu1 %v833_v26, %s1703_s3  ;;  %v834_v31 = vmul.f32 %v833_v26, %v746_v22 }
 0xf93   :  { %v837_v40 = vpop.permute.xlu1 %836 }
 0xf94   :  { %v839_v41 = vmul.f32 %v837_v40, %v833_v26 }
 0xf96   :  { %841 = vrot.lane.b32.xlu0 %v839_v41, %s1704_s18 }
0x1008   :  { %v842_v42 = vpop.permute.xlu0 %841 }
0x1009   :  { %v844_v43 = vadd.f32 %v842_v42, %v834_v31 }
0x100b   :  { %1559 = vtanh.f32 %v844_v43 }
0x1015   :  { %v1560_v44 = vpop.eup %1559 }
0x1016   :  { %847 = vrot.lane.b32.xlu1 %v1560_v44, %s1703_s3 }
0x1088   :  { %v848_v45 = vpop.permute.xlu1 %847 }
0x1089   :  { %v850_v47 = vmul.f32 %v848_v45, %v833_v26 }
0x108b   :  { %854 = vrot.lane.b32.xlu0 %v850_v47, %s1704_s18 }
0x10fd   :  { %v855_v48 = vpop.permute.xlu0 %854 }
0x10fe   :  { %1413 = vmatmul.mubr.msk.f32.vlgmr.msra.gmra.mrb[10].mxu1 %vm89_vm0, %v855_v48 }
0x10ff   :  { %1434 = vmatprep.mubr.msk.f32.mxu1 %vm1700_vm1, %v1701_v3  ;;  %1519 = vmatpush3.bf16.msra.mxu1 %v1518_v21 }
0x1100   :  { %1520 = vmatprep.subr.bf16.mxu1 %v1699_v1 }
0x11d1   :  { %v924_v51 = vpop.f32.mrb[10].mxu1 }
0x11d2   :  { %v928_v52 = vadd.f32 %v924_v51, %v241_v50  ;;  %v1414_v54 = vpop.f32.mrb[11].mxu1  ;;  %v1220_v50 = vld [vmem:[%s2014_s4] ss:$0 sm:$0xff]  ;;  %s1706_s4 = smov [#allocation13]  }
0x11d3   :  { %s1200_s19 = sshll.u32 %s1706_s4, 4  ;;  %s1201_s19 = int_to_ptr.vmem [resolvable:$true] %s1200_s19 }
0x11d4   :  { %1561 = vtanh.f32 %v928_v52  ;;  %v1221_v52 = vld [vmem:[%s2015_s5] ss:$0 sm:$0xff]  ;;  %s1663_s5 = scalar_lea.vmem %s1201_s19, 128  ;;  %p1668_p5 = scmp.lt.s32.totalorder %s1201_s19, %s1201_s19 }
0x11d5   :  { %p1664_p4 = scmp.ne.s32.totalorder %s1201_s19, %s1663_s5  ;;  %p1669_p6 = scmp.lt.s32.totalorder %s1663_s5, %s1663_s5 }
0x11d7   :  { %p1670_p7 = por %p1669_p6, %p1668_p5 }
0x11d9   :  { %p1671_p8 = pnand %p1670_p7, %p1664_p4 }
0x11de   :  { %v1562_v55 = vpop.eup %1561 }
0x11df   :  { %v930_v56 = vmul.f32 %v1562_v55, %v1841_v14 }
0x11e1   :  { %v931_v57 = vadd.f32 %v930_v56, %v1877_v53  ;;  %v1222_v56 = vld [vmem:[%s2017_s7] ss:$0 sm:$0xff] }
0x11e3   :  { %934 = vrot.lane.b32.xlu1 %v931_v57, %s1703_s3  ;;  %v932_v3 = vmul.f32 %v931_v57, %v844_v43 }
0x1255   :  { %v935_v58 = vpop.permute.xlu1 %934 }
0x1256   :  { %v937_v59 = vmul.f32 %v935_v58, %v931_v57 }
0x1258   :  { %939 = vrot.lane.b32.xlu0 %v937_v59, %s1704_s18 }
0x12ca   :  { %v940_v60 = vpop.permute.xlu0 %939 }
0x12cb   :  { %v942_v61 = vadd.f32 %v940_v60, %v932_v3 }
0x12cd   :  { %1563 = vtanh.f32 %v942_v61 }
0x12d7   :  { %v1564_v62 = vpop.eup %1563 }
0x12d8   :  { %945 = vrot.lane.b32.xlu1 %v1564_v62, %s1703_s3 }
0x134a   :  { %v946_v63 = vpop.permute.xlu1 %945 }
0x134b   :  { %v948_v2 = vmul.f32 %v946_v63, %v931_v57 }
0x134d   :  { %952 = vrot.lane.b32.xlu0 %v948_v2, %s1704_s18 }
0x13bf   :  { %v953_v4 = vpop.permute.xlu0 %952 }
0x13c0   :  { %1424 = vmatmul.mubr.msk.f32.vlgmr.msra.gmra.mrb[10].mxu0 %vm89_vm0, %v953_v4 }
0x1493   :  { %v1022_v7 = vpop.f32.mrb[10].mxu0 }
0x1494   :  { %v1026_v8 = vadd.f32 %v1022_v7, %v242_v6  ;;  %v1425_v9 = vpop.f32.mrb[11].mxu0 }
0x1496   :  { %1565 = vtanh.f32 %v1026_v8 }
0x14a0   :  { %v1566_v10 = vpop.eup %1565 }
0x14a1   :  { %v1028_v11 = vmul.f32 %v1566_v10, %v1841_v14  ;;  %v1105_v14 = vld [vmem:[#allocation11 + $0x10] sm:$0xff] }
0x14a3   :  { %v1029_v12 = vadd.f32 %v1028_v11, %v1877_v53  ;;  %v1106_v53 = vld [vmem:[#allocation11 + $0x18] sm:$0xff] }
0x14a4   :  { %v1521_v22 = vpack.c.bf16 %v1106_v53, %v1105_v14 }
0x14a5   :  { %1032 = vrot.lane.b32.xlu1 %v1029_v12, %s1703_s3  ;;  %v1030_v16 = vmul.f32 %v1029_v12, %v942_v61 }
0x14a6   :  { %1522 = vmatpush3.bf16.msra.mxu1 %v1521_v22 }
0x1517   :  { %v1033_v13 = vpop.permute.xlu1 %1032 }
0x1518   :  { %v1035_v15 = vmul.f32 %v1033_v13, %v1029_v12 }
0x151a   :  { %1037 = vrot.lane.b32.xlu0 %v1035_v15, %s1704_s18 }
0x158c   :  { %v1038_v17 = vpop.permute.xlu0 %1037 }
0x158d   :  { %v1040_v46 = vadd.f32 %v1038_v17, %v1030_v16 }
0x158f   :  { %1567 = vtanh.f32 %v1040_v46 }
0x1599   :  { %v1568_v18 = vpop.eup %1567 }
0x159a   :  { %1043 = vrot.lane.b32.xlu1 %v1568_v18, %s1703_s3 }
0x159e   :  { %1053 = vrot.lane.b32.xlu1 %v1040_v46, %s1705_s10 }
0x160c   :  { %v1044_v23 = vpop.permute.xlu1 %1043 }
0x160d   :  { %v1046_v24 = vmul.f32 %v1044_v23, %v1029_v12 }
0x160f   :  { %1048 = vrot.lane.b32.xlu0 %v1046_v24, %s1704_s18 }
0x1610   :  { %v1054_v25 = vpop.permute.xlu1 %1053 }
0x1611   :  { %1056 = vst.msk [vmem:[#allocation3] sm:$0xff] %vm89_vm0, %v1054_v25 }
0x1681   :  { %v1049_v27 = vpop.permute.xlu0 %1048 }
0x1682   :  { %1051 = vst.msk [vmem:[#allocation2] sm:$0xff] %vm89_vm0, %v1049_v27 }
0x1689   :  { %v1060_v29 = vld [vmem:[#allocation2] sm:$0xff] }
0x168a   :  { %v1064_v30 = vsel %vm1063_vm5, %v1060_v29, 0.0 }
0x168b   :  { %v1065_v32 = vsel %vm89_vm0, %v1064_v30, 0.0 }
0x168c   :  { %v1066_v33 = vrot.slane %v1065_v32, 4 }
0x168e   :  { %v1067_v1 = vadd.f32 %v1066_v33, %v1065_v32 }
0x1690   :  { %v1068_v34 = vrot.slane %v1067_v1, 2 }
0x1692   :  { %v1069_v35 = vadd.f32 %v1068_v34, %v1067_v1 }
0x1694   :  { %v1070_v36 = vrot.slane %v1069_v35, 1 }
0x1696   :  { %v1071_v37 = vadd.f32 %v1070_v36, %v1069_v35 }
0x1698   :  { %v1072_v38 = vmul.f32 0.5, %v1071_v37 }
0x169a   :  { %v1073_v39 = vsub.f32 %v1060_v29, %v1072_v38 }
0x169c   :  { %v1074_v26 = vmul.f32 %v1073_v39, %v1073_v39 }
0x169e   :  { %v1075_v40 = vsel %vm1063_vm5, %v1074_v26, 0.0 }
0x169f   :  { %v1076_v41 = vsel %vm89_vm0, %v1075_v40, 0.0 }
0x16a0   :  { %v1077_v31 = vrot.slane %v1076_v41, 4 }
0x16a2   :  { %v1078_v42 = vadd.f32 %v1077_v31, %v1076_v41 }
0x16a4   :  { %v1079_v0 = vrot.slane %v1078_v42, 2 }
0x16a6   :  { %v1080_v43 = vadd.f32 %v1079_v0, %v1078_v42 }
0x16a8   :  { %v1081_v44 = vrot.slane %v1080_v43, 1 }
0x16aa   :  { %v1082_v45 = vadd.f32 %v1081_v44, %v1080_v43 }
0x16ac   :  { %v1083_v47 = vmul.f32 0.5, %v1082_v45 }
0x16ae   :  { %v1084_v48 = vadd.f32 1e-05, %v1083_v47 }
0x16b0   :  { %1569 = vrsqrt.f32 %v1084_v48 }
0x16ba   :  { %v1570_v49 = vpop.eup %1569 }
0x16bb   :  { %v1086_v51 = vmul.f32 %v1570_v49, %v1073_v39 }
0x16bd   :  { %v1094_v54 = vmul.f32 %v1220_v50, %v1086_v51 }
0x16bf   :  { %v1102_v55 = vadd.f32 %v1221_v52, %v1094_v54 }
0x16c1   :  { %1435 = vmatmul.mubr.msk.f32.vlgmr.msra.gmra.mrb[12].mxu1 %vm89_vm0, %v1102_v55 }
0x1794   :  { %v1183_v57 = vpop.f32.mrb[12].mxu1 }
0x1795   :  { %v1184_v58 = vadd.f32 %v1222_v56, %v1183_v57  ;;  %v1436_v59 = vpop.f32.mrb[13].mxu1 }
0x1797   :  { %v1224_v3 = vmul.f32 -1.442695, %v1184_v58 }
0x1799   :  { %1571 = vpow2.f32 %v1224_v3 }
0x17a3   :  { %v1572_v60 = vpop.eup %1571 }
0x17a4   :  { %v1190_v61 = vadd.f32 1.0, %v1572_v60 }
0x17a6   :  { %1573 = vrcp.f32 %v1190_v61 }
0x17b0   :  { %v1574_v62 = vpop.eup %1573 }
0x17b1   :  { %1193 = vst [vmem:[#allocation13] sm:$0xff] %v1574_v62 }
0x17b2   :  { %1674 = shalt.err (!%p1671_p8)
}
0x17b3   :  { %s1675_s21 = scalar_lea.hbm %s2018_s8, 128 }
0x17b4   :  { %p1676_p9 = scmp.ne.s32.totalorder %s2018_s8, %s1675_s21  ;;  %p1679_p10 = scmp.lt.u32.totalorder %s1675_s21, %s2018_s8 }
0x17b6   :  { %p1681_p11 = pnand %p1679_p10, %p1676_p9 }
0x17b8   :  { %1684 = shalt.err (!%p1681_p11)
}
0x17b9   :  { %1203 = dma.vmem_to_hbm [thread:$0]  %s1201_s19, 128, %s2018_s8, [#allocation7]  }
0x17ba   :  { %1691 = dma.done.wait [#allocation7], 128  }
0x17bb   :  { %1692 = vsyncadd [#allocation7], 4294967168 }
0x17bc   :  { %1207 = vsyncpa [#allocation6], 1 }
0x17bd   :  { %1208 = vsyncpa [#allocation9], 1 }
0x17be   :  { %1209 = vsyncpa [#allocation12], 1 }
0x17bf   :  { %1210 = vsyncpa [#allocation7], 1 }

</bundles_post_ra>
